<compile_context>
chip_gen: v5e
topology: v5e:2x2
jax: 0.10.0
libtpu: 0.0.40
codegen_flags: <defaults>
</compile_context>

<pallas_src>
import functools

import jax
import jax.numpy as jnp
from jax.experimental import pallas as pl
from jax.experimental.pallas import tpu as pltpu

LANES = 128
SUBLANES = 8

_TRANSCENDENTAL = frozenset({"ELU", "softplus", "tanh", "sigmoid"})


def _apply_activation(x, f_name):
    """Pure-jnp activation matching the PyTorch module's semantics."""
    if f_name == "ReLU":
        return jnp.maximum(x, 0.0)                      # torch.clamp(x, min=0)
    elif f_name == "LReLU":
        return jnp.where(x < 0, 0.01 * x, x)
    elif f_name == "ELU":
        # expm1 for precision at small |x| (mathematically == exp(x) - 1)
        return jnp.where(x < 0, jnp.expm1(x), x)
    elif f_name == "softplus":
        # F.softplus default: beta=1, threshold=20 -> linear above 20
        return jnp.where(x > 20.0, x, jnp.log1p(jnp.exp(jnp.minimum(x, 20.0))))
    elif f_name == "tanh":
        return jnp.tanh(x)
    elif f_name == "sigmoid":
        return jax.nn.sigmoid(x)
    elif f_name == "identity":
        return x
    else:
        raise ValueError(f"Unknown activation function: {f_name}")


def _activation_kernel(x_ref, o_ref, *, f_name, upcast):
    x = x_ref[...]
    if upcast:
        # Only for transcendental branches on sub-f32 inputs (v5e has no bf16
        # EUP; also buys precision).  VPU-only ops stay in the native dtype.
        x = x.astype(jnp.float32)
    o_ref[...] = _apply_activation(x, f_name).astype(o_ref.dtype)


def _run_flat(x_flat, f_name, target_tile_bytes):
    """Run the tiled kernel on a flat array whose size is a multiple of 128."""
    n = x_flat.size
    dtype = x_flat.dtype
    itemsize = jnp.dtype(dtype).itemsize
    # Sublane packing of the dtype: 8 rows (f32), 16 (bf16), 32 (int8/fp8).
    packing = SUBLANES * max(1, 4 // itemsize)

    # Widest lane count (multiple of 128) that divides n -> wide, unmasked vst.
    for W in (1024, 512, 256, 128):
        if n % W == 0:
            break
    rows = n // W
    x2d = x_flat.reshape(rows, W)

    # Row tile: target ~target_tile_bytes per tile, multiple of the packing.
    tm = max(packing, (target_tile_bytes // (W * itemsize)) // packing * packing)
    if rows <= packing:
        tm = rows  # block == full dim: always legal, single grid step
    else:
        # Keep >= ~4 grid steps when possible (>=2 per TensorCore on v7x so
        # the "parallel" axis shards; also keeps double-buffering active).
        cap = max(packing, pl.cdiv(pl.cdiv(rows, 4), packing) * packing)
        tm = min(tm, cap)

    grid = (pl.cdiv(rows, tm),)  # partial last block handled by the pipeline

    upcast = (f_name in _TRANSCENDENTAL) and (itemsize < 4)
    transcendentals = n if f_name in _TRANSCENDENTAL else 0
    cost = pl.CostEstimate(flops=n, transcendentals=transcendentals,
                           bytes_accessed=2 * n * itemsize)

    out2d = pl.pallas_call(
        functools.partial(_activation_kernel, f_name=f_name, upcast=upcast),
        out_shape=jax.ShapeDtypeStruct((rows, W), dtype),
        grid_spec=pltpu.PrefetchScalarGridSpec(
            num_scalar_prefetch=0,
            grid=grid,
            in_specs=[pl.BlockSpec((tm, W), lambda i: (i, 0))],
            out_specs=pl.BlockSpec((tm, W), lambda i: (i, 0)),
        ),
        compiler_params=pltpu.CompilerParams(
            dimension_semantics=("parallel",),
            vmem_limit_bytes=48 * 1024 * 1024,  # 2x(in+out)x4MiB = 16MiB << 48MiB
        ),
        cost_estimate=cost,
    )(x2d)

    return out2d.reshape(-1)


def activation_layer(x, f_name="ReLU", *, target_tile_bytes=4 * 1024 * 1024):
    """Elementwise activation on an arbitrarily-shaped array via Pallas."""
    if f_name == "identity":
        return x  # pure no-op: skip the kernel (and a full HBM read+write)

    orig_shape = x.shape
    n = x.size
    if n == 0:
        return x
    x_flat = x.reshape(-1)

    if n % LANES == 0:
        # Fast path: no padding, no slicing -> no extra HBM traffic.
        return _run_flat(x_flat, f_name, target_tile_bytes).reshape(orig_shape)

    # Ragged fallback: pad only to the next multiple of 128 lanes.
    # TODO(synk): handle the tail fully in-kernel (scalar-prefetch valid count
    # + masked store on the last block) to avoid the pad/slice copies.
    n_pad = pl.cdiv(n, LANES) * LANES
    x_padded = jnp.pad(x_flat, (0, n_pad - n))
    y = _run_flat(x_padded, f_name, target_tile_bytes)
    return y[:n].reshape(orig_shape)


if __name__ == "__main__":
    key = jax.random.PRNGKey(0)
    # NCHW input, like a conv feature map: batch=2, channels=4, spatial=16x16
    x = jax.random.normal(key, (2, 4, 16, 16), dtype=jnp.float32) * 3.0
    # Awkward shape to exercise the ragged fallback path.
    x_odd = jax.random.normal(jax.random.PRNGKey(1), (3, 5, 7, 11),
                              dtype=jnp.float32) * 3.0

    ok = True
    for f_name in ["ReLU", "LReLU", "ELU", "softplus", "tanh", "sigmoid", "identity"]:
        for inp in (x, x_odd):
            y = jax.block_until_ready(activation_layer(inp, f_name))
            y_ref = _apply_activation(inp, f_name)
            if not jnp.allclose(y, y_ref, atol=1e-5, rtol=1e-5):
                ok = False
                print(f"MISMATCH for {f_name} shape {inp.shape}")

    if ok:
        print("KERNEL_OK")
</pallas_src>

<mosaic_0001>
module attributes {stable_mosaic.version = 11 : i64} {
  func.func @_activation_kernel(%arg0: i32, %arg1: memref<2x1024xf32, #tpu.memory_space<vmem>>, %arg2: memref<2x1024xf32, #tpu.memory_space<vmem>>) attributes {dimension_semantics = [#tpu.dimension_semantics<parallel>], iteration_bounds = array<i64: 1>, scalar_prefetch = 0 : i64, scratch_operands = 0 : i64, tpu.core_type = #tpu.core_type<tc>, window_params = [{transform_indices = @transform_0, window_bounds = array<i64: 2, 1024>}, {transform_indices = @transform_1, window_bounds = array<i64: 2, 1024>}]} {
    %c0 = arith.constant 0 : index
    %c0_0 = arith.constant 0 : index
    %0 = vector.load %arg1[%c0, %c0_0] : memref<2x1024xf32, #tpu.memory_space<vmem>>, vector<2x1024xf32>
    %cst = arith.constant 0.000000e+00 : f32
    %1 = vector.broadcast %cst : f32 to vector<2x1024xf32>
    %2 = arith.maximumf %0, %1 : vector<2x1024xf32>
    %c0_1 = arith.constant 0 : index
    %c0_2 = arith.constant 0 : index
    %3 = vector.load %arg2[%c0_1, %c0_2] : memref<2x1024xf32, #tpu.memory_space<vmem>>, vector<2x1024xf32>
    tpu.vector_store %arg2[%c0_1, %c0_2], %2 {strides = array<i32>} : memref<2x1024xf32, #tpu.memory_space<vmem>>, vector<2x1024xf32>,
    return
  }
  func.func @transform_0(%arg0: i32) -> (i32, i32) {
    %c0_i32 = arith.constant 0 : i32
    %c0_i32_0 = arith.constant 0 : i32
    return %arg0, %c0_i32 : i32, i32
  }
  func.func @transform_1(%arg0: i32) -> (i32, i32) {
    %c0_i32 = arith.constant 0 : i32
    %c0_i32_0 = arith.constant 0 : i32
    return %arg0, %c0_i32 : i32, i32
  }
}

</mosaic_0001>

<bundles_post_ra>
// kernel: tpu_custom_call.1
= control target key start
LH: loop header
LB: loop body
LE: loop exit
PB: predicated region body
PF: predicated region fallthrough
CT: control target
= control target key end

     0   :  { %6 = vsyncpa [#allocation3], 0  ;;  %s118_s0 = inlined_call_operand.hbm [shape: f32[2,1024], index: 0, kind: input, shape index: {}]   ;;  %s119_s1 = inlined_call_operand.hbm [shape: f32[2,1024], index: 1, kind: output, shape index: {}]  }
   0x1   :  { %7 = vsyncpa [#allocation4], 0  ;;  %s13_s8 = sshll.u32 %s118_s0, 4  ;;  %s100_s9 = smov [#allocation2]   ;;  %s14_s8 = int_to_ptr.hbm [resolvable:$true] %s13_s8 }
   0x2   :  { %s15_s10 = sshll.u32 %s100_s9, 4  ;;  %s16_s10 = int_to_ptr.vmem [resolvable:$true] %s15_s10 }
   0x3   :  { %18 = dma.hbm_to_vmem [thread:$0]  %s14_s8, 256, %s16_s10, [#allocation3]  }
   0x4   :  { %96 = dma.done.wait [#allocation3], 256  }
   0x5   :  { %97 = vsyncadd [#allocation3], 4294967040  ;;  %s101_s11 = smov [#allocation5]   ;;  %s36_s15 = sshll.u32 %s119_s1, 4  ;;  %v23_v0 = vld [vmem:[#allocation2] sm:$0xff]  ;;  %v24_v1 = vld [vmem:[#allocation2 + $0x8] sm:$0xff]  ;;  %s37_s15 = int_to_ptr.hbm [resolvable:$true] %s36_s15 }
   0x6   :  { %s34_s12 = sshll.u32 %s101_s11, 4  ;;  %v25_v2 = vmax.f32 %v23_v0, 0.0  ;;  %v26_v3 = vmax.f32 %v24_v1, 0.0  ;;  %s35_s12 = int_to_ptr.vmem [resolvable:$true] %s34_s12 }
   0x8   :  { %27 = vst [vmem:[#allocation5] sm:$0xff] %v25_v2 }
   0x9   :  { %28 = vst [vmem:[#allocation5 + $0x8] sm:$0xff] %v26_v3 }
   0xa   :  { %39 = dma.vmem_to_hbm [thread:$0]  %s35_s12, 256, %s37_s15, [#allocation4]  }
   0xb   :  { %98 = dma.done.wait [#allocation4], 256  }
   0xc   :  { %99 = vsyncadd [#allocation4], 4294967040 }
   0xd   :  { %44 = vsyncpa [#allocation3], 1 }
   0xe   :  { %45 = vsyncpa [#allocation4], 1 }

</bundles_post_ra>
